<compile_context>
chip_gen: v7x
topology: tpu7x:2x2x1
jax: 0.10.0
libtpu: 0.0.40
codegen_flags: <defaults>
</compile_context>

<pallas_src>
import jax
import jax.numpy as jnp
from jax.experimental import pallas as pl
from jax.experimental.pallas import tpu as pltpu

# ---------------- configuration (small, consistent with the module) ----------
MODE = "absolute"
NUM_TIME_LOC = 6                      # [year_age, month, day, hour, min, sec]
VOCABS = [10, 13, 32, 24, 60, 60]     # max_year_age=10, 13, 32, 24, 60, 60
TIME_HIDDENS = 128
NUM_HIDDENS = 64
INIT_STD = 0.02
BATCH, SEQ = 2, 8
PAD_VOCAB = 64                        # >= max(VOCABS); padded rows never selected
FUSED_K = NUM_TIME_LOC * PAD_VOCAB    # 384 (multiple of 128 -> full MXU depth)
TILE_N = 1024                         # rows per grid step (fits v7x VMEM easily)


def _round_up(x, m):
    return pl.cdiv(x, m) * m


# ---------------- Pallas kernel ----------------------------------------------
def ts_embed_kernel(ids_ref, ft_ref, b1_ref, w2_ref, b2_ref, out_ref):
    # ids_ref: (T, 6) int32, column i already offset by i*PAD_VOCAB and clamped.
    # ft_ref:  (FUSED_K, NH) bf16  — embedding tables with W1 folded in.
    # b1_ref:  (1, NH) f32; w2_ref: (NH, NH) bf16; b2_ref: (1, NH) f32.
    # out_ref: (T, NH) f32
    t = ids_ref.shape[0]
    k = ft_ref.shape[0]

    ids = ids_ref[...]                                        # (T, 6) int32
    iota = jax.lax.broadcasted_iota(jnp.int32, (t, k), 1)     # lane iota 0..383
    match = ids[:, 0:1] == iota                               # (T, K) bool
    for i in range(1, NUM_TIME_LOC):                          # static unroll;
        match = jnp.logical_or(match, ids[:, i:i + 1] == iota)  # segments disjoint
    onehot = match.astype(jnp.float32).astype(jnp.bfloat16)   # exact in bf16

    # Fused lookup + first Linear:  (T, 384) @ (384, 64), f32 accumulation.
    h = jnp.dot(onehot, ft_ref[...], preferred_element_type=jnp.float32)
    h = h + b1_ref[...]
    h = h * jax.nn.sigmoid(h)                                 # SiLU in f32 (EUP)

    out = jnp.dot(h.astype(jnp.bfloat16), w2_ref[...],
                  preferred_element_type=jnp.float32) + b2_ref[...]
    out_ref[...] = out


# ---------------- wrapper ------------------------------------------------------
def timestamp_embedding(timestamps, tables, w1, b1, w2, b2, *, tile_n=TILE_N):
    """timestamps: (..., 6) int -> (..., NUM_HIDDENS) f32."""
    orig_shape = timestamps.shape
    assert orig_shape[-1] == NUM_TIME_LOC
    ts = timestamps.reshape(-1, NUM_TIME_LOC).astype(jnp.int32)
    n = ts.shape[0]

    # Clamp to per-column vocab (PyTorch would raise on OOB; we clamp), then
    # offset each column into its segment of the fused index space.
    vocabs = jnp.asarray(VOCABS, jnp.int32)
    offsets = jnp.arange(NUM_TIME_LOC, dtype=jnp.int32) * PAD_VOCAB
    ids = jnp.clip(ts, 0, vocabs[None, :] - 1) + offsets[None, :]

    # Fold W1 into the embedding tables (linear, exact), cast weights to bf16.
    w1_blocks = w1.reshape(NUM_TIME_LOC, TIME_HIDDENS, NUM_HIDDENS)
    fused = jnp.einsum("ivh,iho->ivo", tables, w1_blocks)
    fused = fused.reshape(FUSED_K, NUM_HIDDENS).astype(jnp.bfloat16)
    w2_bf = w2.astype(jnp.bfloat16)
    b1_f = b1.reshape(1, NUM_HIDDENS).astype(jnp.float32)
    b2_f = b2.reshape(1, NUM_HIDDENS).astype(jnp.float32)

    # Tile the row axis; pad N up to a multiple of the tile (extra rows use
    # valid id 0 and are sliced off afterwards).
    tile = min(tile_n, _round_up(n, 8))
    n_pad = _round_up(n, tile)
    if n_pad != n:
        ids = jnp.pad(ids, ((0, n_pad - n), (0, 0)))
    grid = (n_pad // tile,)

    cost = pl.CostEstimate(
        flops=2 * n_pad * (FUSED_K * NUM_HIDDENS + NUM_HIDDENS * NUM_HIDDENS),
        transcendentals=n_pad * NUM_HIDDENS,
        bytes_accessed=(ids.size * 4 + n_pad * NUM_HIDDENS * 4
                        + fused.size * 2 + w2_bf.size * 2
                        + (b1_f.size + b2_f.size) * 4),
    )

    out = pl.pallas_call(
        ts_embed_kernel,
        out_shape=jax.ShapeDtypeStruct((n_pad, NUM_HIDDENS), jnp.float32),
        grid_spec=pltpu.PrefetchScalarGridSpec(
            num_scalar_prefetch=0,
            grid=grid,
            in_specs=[
                pl.BlockSpec((tile, NUM_TIME_LOC), lambda i: (i, 0)),        # ids
                pl.BlockSpec((FUSED_K, NUM_HIDDENS), lambda i: (0, 0)),      # fused tables
                pl.BlockSpec((1, NUM_HIDDENS), lambda i: (0, 0)),            # b1
                pl.BlockSpec((NUM_HIDDENS, NUM_HIDDENS), lambda i: (0, 0)),  # w2
                pl.BlockSpec((1, NUM_HIDDENS), lambda i: (0, 0)),            # b2
            ],
            out_specs=pl.BlockSpec((tile, NUM_HIDDENS), lambda i: (i, 0)),
        ),
        compiler_params=pltpu.CompilerParams(
            dimension_semantics=("parallel",),
            vmem_limit_bytes=32 * 1024 * 1024,
        ),
        cost_estimate=cost,
    )(ids, fused, b1_f, w2_bf, b2_f)

    out = out[:n]
    return out.reshape(*orig_shape[:-1], NUM_HIDDENS)


# ---------------- deterministic parameter init --------------------------------
def init_params(key):
    keys = jax.random.split(key, NUM_TIME_LOC + 2)
    tables = jnp.zeros((NUM_TIME_LOC, PAD_VOCAB, TIME_HIDDENS), jnp.float32)
    for i, vsz in enumerate(VOCABS):
        t = INIT_STD * jax.random.normal(keys[i], (vsz, TIME_HIDDENS), jnp.float32)
        tables = tables.at[i, :vsz, :].set(t)
    # Linear weights stored as (in, out) (PyTorch stores (out, in); y = x @ W.T)
    w1 = INIT_STD * jax.random.normal(
        keys[NUM_TIME_LOC], (NUM_TIME_LOC * TIME_HIDDENS, NUM_HIDDENS), jnp.float32)
    b1 = jnp.zeros((1, NUM_HIDDENS), jnp.float32)
    w2 = INIT_STD * jax.random.normal(
        keys[NUM_TIME_LOC + 1], (NUM_HIDDENS, NUM_HIDDENS), jnp.float32)
    b2 = jnp.zeros((1, NUM_HIDDENS), jnp.float32)
    return tables, w1, b1, w2, b2


# ---------------- pure-JAX reference (same semantics as the PyTorch forward) --
def reference(timestamps, tables, w1, b1, w2, b2):
    ts = timestamps.reshape(-1, NUM_TIME_LOC)
    embs = [tables[i][ts[:, i]] for i in range(NUM_TIME_LOC)]
    cat = jnp.concatenate(embs, axis=-1)
    h = cat @ w1 + b1
    h = h * jax.nn.sigmoid(h)
    out = h @ w2 + b2
    return out.reshape(*timestamps.shape[:-1], NUM_HIDDENS)


if __name__ == "__main__":
    key = jax.random.PRNGKey(0)
    pkey, dkey = jax.random.split(key)
    tables, w1, b1, w2, b2 = init_params(pkey)

    # deterministic timestamps, each column within its vocab range
    cols = []
    ckeys = jax.random.split(dkey, NUM_TIME_LOC)
    for i, vsz in enumerate(VOCABS):
        cols.append(jax.random.randint(ckeys[i], (BATCH, SEQ, 1), 0, vsz, jnp.int32))
    timestamps = jnp.concatenate(cols, axis=-1)        # (2, 8, 6) int32

    fwd = jax.jit(timestamp_embedding)
    out = fwd(timestamps, tables, w1, b1, w2, b2)
    out = jax.block_until_ready(out)

    ref = reference(timestamps, tables, w1, b1, w2, b2)
    assert out.shape == (BATCH, SEQ, NUM_HIDDENS)
    # bf16 weights in the kernel vs f32 reference -> relaxed tolerance.
    assert jnp.allclose(out, ref, atol=5e-4, rtol=5e-2), "mismatch vs reference"

    print("KERNEL_OK")
</pallas_src>

<mosaic_0001>
module attributes {stable_mosaic.version = 11 : i64} {
  func.func @ts_embed_kernel(%arg0: i32, %arg1: memref<16x6xi32, #tpu.memory_space<vmem>>, %arg2: memref<384x64xbf16, #tpu.memory_space<vmem>>, %arg3: memref<1x64xf32, #tpu.memory_space<vmem>>, %arg4: memref<64x64xbf16, #tpu.memory_space<vmem>>, %arg5: memref<1x64xf32, #tpu.memory_space<vmem>>, %arg6: memref<16x64xf32, #tpu.memory_space<vmem>>) attributes {dimension_semantics = [#tpu.dimension_semantics<parallel>], iteration_bounds = array<i64: 1>, scalar_prefetch = 0 : i64, scratch_operands = 0 : i64, tpu.core_type = #tpu.core_type<tc>, window_params = [{transform_indices = @transform_0, window_bounds = array<i64: 16, 6>}, {pipeline_mode = #tpu.pipeline_mode<synchronous>, transform_indices = @transform_1, window_bounds = array<i64: 384, 64>}, {pipeline_mode = #tpu.pipeline_mode<synchronous>, transform_indices = @transform_2, window_bounds = array<i64: 1, 64>}, {pipeline_mode = #tpu.pipeline_mode<synchronous>, transform_indices = @transform_3, window_bounds = array<i64: 64, 64>}, {pipeline_mode = #tpu.pipeline_mode<synchronous>, transform_indices = @transform_4, window_bounds = array<i64: 1, 64>}, {transform_indices = @transform_5, window_bounds = array<i64: 16, 64>}]} {
    %c0 = arith.constant 0 : index
    %c0_0 = arith.constant 0 : index
    %0 = vector.load %arg1[%c0, %c0_0] : memref<16x6xi32, #tpu.memory_space<vmem>>, vector<16x6xi32>
    %1 = tpu.iota {dimensions = array<i32: 1>} : vector<16x384xi32>
    %2 = vector.extract_strided_slice %0 {offsets = [0, 0], sizes = [16, 1], strides = [1, 1]} : vector<16x6xi32> to vector<16x1xi32>
    %3 = vector.broadcast %2 : vector<16x1xi32> to vector<16x384xi32>
    %4 = arith.cmpi eq, %3, %1 : vector<16x384xi32>
    %5 = vector.extract_strided_slice %0 {offsets = [0, 1], sizes = [16, 1], strides = [1, 1]} : vector<16x6xi32> to vector<16x1xi32>
    %6 = vector.broadcast %5 : vector<16x1xi32> to vector<16x384xi32>
    %7 = arith.cmpi eq, %6, %1 : vector<16x384xi32>
    %8 = arith.ori %4, %7 : vector<16x384xi1>
    %9 = vector.extract_strided_slice %0 {offsets = [0, 2], sizes = [16, 1], strides = [1, 1]} : vector<16x6xi32> to vector<16x1xi32>
    %10 = vector.broadcast %9 : vector<16x1xi32> to vector<16x384xi32>
    %11 = arith.cmpi eq, %10, %1 : vector<16x384xi32>
    %12 = arith.ori %8, %11 : vector<16x384xi1>
    %13 = vector.extract_strided_slice %0 {offsets = [0, 3], sizes = [16, 1], strides = [1, 1]} : vector<16x6xi32> to vector<16x1xi32>
    %14 = vector.broadcast %13 : vector<16x1xi32> to vector<16x384xi32>
    %15 = arith.cmpi eq, %14, %1 : vector<16x384xi32>
    %16 = arith.ori %12, %15 : vector<16x384xi1>
    %17 = vector.extract_strided_slice %0 {offsets = [0, 4], sizes = [16, 1], strides = [1, 1]} : vector<16x6xi32> to vector<16x1xi32>
    %18 = vector.broadcast %17 : vector<16x1xi32> to vector<16x384xi32>
    %19 = arith.cmpi eq, %18, %1 : vector<16x384xi32>
    %20 = arith.ori %16, %19 : vector<16x384xi1>
    %21 = vector.extract_strided_slice %0 {offsets = [0, 5], sizes = [16, 1], strides = [1, 1]} : vector<16x6xi32> to vector<16x1xi32>
    %22 = vector.broadcast %21 : vector<16x1xi32> to vector<16x384xi32>
    %23 = arith.cmpi eq, %22, %1 : vector<16x384xi32>
    %24 = arith.ori %20, %23 : vector<16x384xi1>
    %25 = arith.extui %24 : vector<16x384xi1> to vector<16x384xi32>
    %26 = arith.sitofp %25 : vector<16x384xi32> to vector<16x384xf32>
    %27 = arith.truncf %26 : vector<16x384xf32> to vector<16x384xbf16>
    %c0_1 = arith.constant 0 : index
    %c0_2 = arith.constant 0 : index
    %28 = vector.load %arg2[%c0_1, %c0_2] : memref<384x64xbf16, #tpu.memory_space<vmem>>, vector<384x64xbf16>
    %cst = arith.constant dense<0.000000e+00> : vector<16x64xf32>
    %29 = tpu.matmul %27, %28, %cst {dimension_numbers = #tpu.dot_dimension_numbers<[1], [0], [0], [1], [0, 0, 1, 1], [], []>} : vector<16x384xbf16>, vector<384x64xbf16>, vector<16x64xf32> -> vector<16x64xf32>
    %c0_3 = arith.constant 0 : index
    %c0_4 = arith.constant 0 : index
    %30 = vector.load %arg3[%c0_3, %c0_4] : memref<1x64xf32, #tpu.memory_space<vmem>>, vector<1x64xf32>
    %31 = vector.broadcast %30 : vector<1x64xf32> to vector<16x64xf32>
    %32 = arith.addf %29, %31 : vector<16x64xf32>
    %33 = arith.negf %32 : vector<16x64xf32>
    %34 = math.exp %33 : vector<16x64xf32>
    %cst_5 = arith.constant 1.000000e+00 : f32
    %35 = vector.broadcast %cst_5 : f32 to vector<16x64xf32>
    %36 = arith.addf %35, %34 : vector<16x64xf32>
    %37 = arith.divf %35, %36 : vector<16x64xf32>
    %38 = arith.mulf %32, %37 : vector<16x64xf32>
    %39 = arith.truncf %38 : vector<16x64xf32> to vector<16x64xbf16>
    %c0_6 = arith.constant 0 : index
    %c0_7 = arith.constant 0 : index
    %40 = vector.load %arg4[%c0_6, %c0_7] : memref<64x64xbf16, #tpu.memory_space<vmem>>, vector<64x64xbf16>
    %cst_8 = arith.constant dense<0.000000e+00> : vector<16x64xf32>
    %41 = tpu.matmul %39, %40, %cst_8 {dimension_numbers = #tpu.dot_dimension_numbers<[1], [0], [0], [1], [0, 0, 1, 1], [], []>} : vector<16x64xbf16>, vector<64x64xbf16>, vector<16x64xf32> -> vector<16x64xf32>
    %c0_9 = arith.constant 0 : index
    %c0_10 = arith.constant 0 : index
    %42 = vector.load %arg5[%c0_9, %c0_10] : memref<1x64xf32, #tpu.memory_space<vmem>>, vector<1x64xf32>
    %43 = vector.broadcast %42 : vector<1x64xf32> to vector<16x64xf32>
    %44 = arith.addf %41, %43 : vector<16x64xf32>
    %c0_11 = arith.constant 0 : index
    %c0_12 = arith.constant 0 : index
    %45 = vector.load %arg6[%c0_11, %c0_12] : memref<16x64xf32, #tpu.memory_space<vmem>>, vector<16x64xf32>
    tpu.vector_store %arg6[%c0_11, %c0_12], %44 {strides = array<i32>} : memref<16x64xf32, #tpu.memory_space<vmem>>, vector<16x64xf32>,
    return
  }
  func.func @transform_0(%arg0: i32) -> (i32, i32) {
    %c0_i32 = arith.constant 0 : i32
    %c0_i32_0 = arith.constant 0 : i32
    return %arg0, %c0_i32 : i32, i32
  }
  func.func @transform_1(%arg0: i32) -> (i32, i32) {
    %c0_i32 = arith.constant 0 : i32
    %c0_i32_0 = arith.constant 0 : i32
    %c0_i32_1 = arith.constant 0 : i32
    return %c0_i32, %c0_i32_0 : i32, i32
  }
  func.func @transform_2(%arg0: i32) -> (i32, i32) {
    %c0_i32 = arith.constant 0 : i32
    %c0_i32_0 = arith.constant 0 : i32
    %c0_i32_1 = arith.constant 0 : i32
    return %c0_i32, %c0_i32_0 : i32, i32
  }
  func.func @transform_3(%arg0: i32) -> (i32, i32) {
    %c0_i32 = arith.constant 0 : i32
    %c0_i32_0 = arith.constant 0 : i32
    %c0_i32_1 = arith.constant 0 : i32
    return %c0_i32, %c0_i32_0 : i32, i32
  }
  func.func @transform_4(%arg0: i32) -> (i32, i32) {
    %c0_i32 = arith.constant 0 : i32
    %c0_i32_0 = arith.constant 0 : i32
    %c0_i32_1 = arith.constant 0 : i32
    return %c0_i32, %c0_i32_0 : i32, i32
  }
  func.func @transform_5(%arg0: i32) -> (i32, i32) {
    %c0_i32 = arith.constant 0 : i32
    %c0_i32_0 = arith.constant 0 : i32
    return %arg0, %c0_i32 : i32, i32
  }
}

</mosaic_0001>

<bundles_post_ra>
// kernel: timestamp_embedding.1
= control target key start
LH: loop header
LB: loop body
LE: loop exit
PB: predicated region body
PF: predicated region fallthrough
CT: control target
= control target key end

     0   :  { %v730_v1 = vmov 1   ;;  %v731_v2 = vmov 0   ;;  %v732_v6 = vmov 0.0   ;;  %v733_v11 = vmov 2   ;;  %s1025_s0 = inlined_call_operand.vmem [shape: s32[16,6], index: 0, kind: input, shape index: {}]   ;;  %s1026_s1 = inlined_call_operand.vmem [shape: bf16[384,64], index: 1, kind: input, shape index: {}]   ;;  %s1027_s2 = inlined_call_operand.vmem [shape: f32[1,64], index: 2, kind: input, shape index: {}]   ;;  %s1028_s3 = inlined_call_operand.vmem [shape: bf16[64,64], index: 3, kind: input, shape index: {}]   ;;  %s1029_s4 = inlined_call_operand.vmem [shape: f32[1,64], index: 4, kind: input, shape index: {}]   ;;  %s1030_s5 = inlined_call_operand.hbm [shape: f32[16,64], index: 5, kind: output, shape index: {}]  }
   0x1   :  { %v22_v0 = vld [vmem:[%s1025_s0] sm:$0xff]  ;;  %662 = vset.pattern.permute.xlu1 %v730_v1  ;;  %661 = vset.pattern.permute.xlu0 %v731_v2  ;;  %v777_v3 = vld [vmem:[%s1025_s0 + $0x8] sm:$0xff]  ;;  %v734_v12 = vmov 3   ;;  %v676_v13 = vld [vmem:[%s1026_s1 + $0x50] sm:$0xff]   ;;  %v735_v18 = vmov 4   ;;  %v736_v19 = vmov 5  }
   0x2   :  { %41 = vperm.xlu1 %662, %v22_v0   ;;  %29 = vperm.xlu0 %661, %v22_v0   ;;  %v670_v4 = vld [vmem:[%s1026_s1 + $0x40] sm:$0xff]   ;;  %v673_v8 = vld [vmem:[%s1026_s1 + $0x48] sm:$0xff]   ;;  %v677_v14 = vld [vmem:[%s1026_s1 + $0x90] sm:$0xff]  }
   0x3   :  { %v671_v5 = vld [vmem:[%s1026_s1 + $0x80] sm:$0xff]   ;;  %618 = vmatprep.subr.bf16.mxu1 %v732_v6  ;;  %582 = vmatprep.subr.bf16.mxu0 %v670_v4  ;;  %v674_v9 = vld [vmem:[%s1026_s1 + $0x88] sm:$0xff]   ;;  %v678_v15 = vld [vmem:[%s1026_s1 + $0x10] sm:$0xff]  }
   0x4   :  { %v672_v7 = vld [vmem:[%s1026_s1] sm:$0xff]   ;;  %619 = vmatpush3.bf16.msra.mxu1 %v671_v5  ;;  %v675_v10 = vld [vmem:[%s1026_s1 + $0x8] sm:$0xff]   ;;  %v679_v16 = vld [vmem:[%s1026_s1 + $0x58] sm:$0xff]  }
   0x5   :  { %583 = vmatpush3.bf16.msra.mxu0 %v672_v7  ;;  %620 = vmatprep.subr.bf16.mxu1 %v732_v6  ;;  %v680_v17 = vld [vmem:[%s1026_s1 + $0x98] sm:$0xff]   ;;  %v682_v21 = vld [vmem:[%s1026_s1 + $0x60] sm:$0xff]  }
   0x6   :  { %44 = vperm.xlu1 %662, %v777_v3   ;;  %32 = vperm.xlu0 %661, %v777_v3   ;;  %v681_v20 = vld [vmem:[%s1026_s1 + $0x18] sm:$0xff]   ;;  %v683_v22 = vld [vmem:[%s1026_s1 + $0xa0] sm:$0xff]  }
   0x7   :  { %584 = vmatprep.subr.bf16.mxu0 %v673_v8  ;;  %v684_v23 = vld [vmem:[%s1026_s1 + $0x20] sm:$0xff]  }
   0x8   :  { %621 = vmatpush3.bf16.msra.mxu1 %v674_v9 }
   0x9   :  { %585 = vmatpush3.bf16.msra.mxu0 %v675_v10  ;;  %622 = vmatprep.subr.bf16.mxu1 %v732_v6 }
   0xa   :  { %664 = vset.pattern.permute.xlu1 %v733_v11  ;;  %663 = vset.pattern.permute.xlu0 %v733_v11 }
   0xb   :  { %62 = vperm.xlu1 %664, %v777_v3   ;;  %59 = vperm.xlu0 %663, %v22_v0  }
   0xc   :  { %586 = vmatprep.subr.bf16.mxu0 %v676_v13  ;;  %623 = vmatpush3.bf16.msra.mxu1 %v677_v14 }
   0xd   :  { %587 = vmatpush3.bf16.msra.mxu0 %v678_v15  ;;  %624 = vmatprep.subr.bf16.mxu1 %v732_v6 }
   0xe   :  { %588 = vmatprep.subr.bf16.mxu0 %v679_v16 }
   0xf   :  { %665 = vset.pattern.permute.xlu1 %v734_v12  ;;  %666 = vset.pattern.permute.xlu0 %v734_v12 }
  0x10   :  { %77 = vperm.xlu1 %665, %v22_v0   ;;  %80 = vperm.xlu0 %666, %v777_v3  }
  0x11   :  { %625 = vmatpush3.bf16.msra.mxu1 %v680_v17  ;;  %589 = vmatpush3.bf16.msra.mxu0 %v681_v20 }
  0x12   :  { %626 = vmatprep.subr.bf16.mxu1 %v732_v6  ;;  %590 = vmatprep.subr.bf16.mxu0 %v682_v21 }
  0x14   :  { %667 = vset.pattern.permute.xlu1 %v735_v18  ;;  %668 = vset.pattern.permute.xlu0 %v736_v19 }
  0x15   :  { %95 = vperm.xlu1 %667, %v22_v0   ;;  %113 = vperm.xlu0 %668, %v22_v0  }
  0x19   :  { %98 = vperm.xlu1 %667, %v777_v3  }
  0x1a   :  { %10 = vsyncpa [#allocation3], 0  ;;  %627 = vmatpush3.bf16.msra.mxu1 %v683_v22  ;;  %v685_v24 = vld [vmem:[%s1026_s1 + $0x68] sm:$0xff]   ;;  %591 = vmatpush3.bf16.msra.mxu0 %v684_v23  ;;  %v688_v27 = vld [vmem:[%s1026_s1 + $0x70] sm:$0xff]   ;;  %vm1031_vm0 = vmmov 0   ;;  %v24_v33 = vlaneseq  ;;  %v1034_v42 = vmov 0 }
  0x1b   :  { %v686_v25 = vld [vmem:[%s1026_s1 + $0xa8] sm:$0xff]   ;;  %628 = vmatprep.subr.bf16.mxu1 %v732_v6  ;;  %592 = vmatprep.subr.bf16.mxu0 %v685_v24  ;;  %v689_v28 = vld [vmem:[%s1026_s1 + $0xb0] sm:$0xff]   ;;  %v691_v30 = vld [vmem:[%s1026_s1 + $0x78] sm:$0xff]   ;;  %v1036_v43 = vmov 0  ;;  %v1040_v47 = vmov 0  ;;  %v1042_v48 = vmov 0 }
  0x1c   :  { %v687_v26 = vld [vmem:[%s1026_s1 + $0x28] sm:$0xff]   ;;  %v690_v29 = vld [vmem:[%s1026_s1 + $0x30] sm:$0xff]   ;;  %v692_v31 = vld [vmem:[%s1026_s1 + $0xb8] sm:$0xff]   ;;  %634 = vmatprep.mubr.msk.bf16.mxu1 %vm1031_vm0, %v732_v6  ;;  %v868_v34 = vand.u32 127, %v24_v33  ;;  %v1048_v52 = vmov 0  ;;  %v1056_v57 = vmov 0 }
  0x1d   :  { %669 = vset.pattern.permute.xlu1 %v736_v19  ;;  %v693_v32 = vld [vmem:[%s1026_s1 + $0x38] sm:$0xff]   ;;  %v1058_v59 = vmov 0  ;;  %v694_v7 = vld [vmem:[%s1028_s3] sm:$0xff]   ;;  %v695_v8 = vld [vmem:[%s1028_s3 + $0x8] sm:$0xff]   ;;  %s738_s27 = smov [#allocation2]  }
  0x1e   :  { %116 = vperm.xlu1 %669, %v777_v3   ;;  %629 = vmatpush3.bf16.msra.mxu1 %v686_v25  ;;  %v871_v37 = vadd.s32 128, %v868_v34  ;;  %v874_v38 = vadd.s32 256, %v868_v34  ;;  %v696_v9 = vld [vmem:[%s1028_s3 + $0x10] sm:$0xff]   ;;  %v697_v10 = vld [vmem:[%s1028_s3 + $0x18] sm:$0xff]   ;;  %v549_v16 = vld [vmem:[%s1027_s2] ss:$0 sm:$0xff] }
  0x1f   :  { %593 = vmatpush3.bf16.msra.mxu0 %v687_v26  ;;  %630 = vmatprep.subr.bf16.mxu1 %v732_v6  ;;  %s532_s0 = sshll.u32 %s738_s27, 4  ;;  %s533_s0 = int_to_ptr.vmem [resolvable:$true] %s532_s0 }
  0x20   :  { %594 = vmatprep.subr.bf16.mxu0 %v688_v27  ;;  %s706_s28 = scalar_lea.vmem %s533_s0, 256  ;;  %p711_p1 = scmp.lt.s32.totalorder %s533_s0, %s533_s0 }
  0x21   :  { %p707_p0 = scmp.ne.s32.totalorder %s533_s0, %s706_s28  ;;  %p712_p2 = scmp.lt.s32.totalorder %s706_s28, %s706_s28 }
  0x22   :  { %631 = vmatpush3.bf16.msra.mxu1 %v689_v28 }
  0x23   :  { %595 = vmatpush3.bf16.msra.mxu0 %v690_v29  ;;  %632 = vmatprep.subr.bf16.mxu1 %v732_v6  ;;  %p713_p3 = por %p712_p2, %p711_p1 }
  0x24   :  { %596 = vmatprep.subr.bf16.mxu0 %v691_v30 }
  0x25   :  { %p714_p4 = pnand %p713_p3, %p707_p0 }
  0x26   :  { %633 = vmatpush3.bf16.msra.mxu1 %v692_v31 }
  0x27   :  { %597 = vmatpush3.bf16.msra.mxu0 %v693_v32 }
  0x28   :  { %638 = vmatprep.subr.bf16.mxu0 %v732_v6 }
  0x81   :  { %v42_v35 = vpop.permute.xlu1 %41  ;;  %v30_v36 = vpop.permute.xlu0 %29 }
  0x82   :  { %vm46_vm1 = vcmp.eq.s32.totalorder %v42_v35, %v868_v34  ;;  %vm34_vm2 = vcmp.eq.s32.totalorder %v30_v36, %v868_v34  ;;  %vm47_vm3 = vcmp.eq.s32.totalorder %v42_v35, %v871_v37  ;;  %vm48_vm4 = vcmp.eq.s32.totalorder %v42_v35, %v874_v38 }
  0x83   :  { %vm35_vm5 = vcmp.eq.s32.totalorder %v30_v36, %v871_v37  ;;  %vm36_vm6 = vcmp.eq.s32.totalorder %v30_v36, %v874_v38  ;;  %vm884_vm9 = vmor %vm34_vm2, %vm46_vm1  ;;  %v576_v36 = vld [vmem:[%s1029_s4] ss:$0 sm:$0xff] }
  0x84   :  { %vm890_vm12 = vmor %vm35_vm5, %vm47_vm3 }
  0x85   :  { %v45_v39 = vpop.permute.xlu1 %44  ;;  %v33_v40 = vpop.permute.xlu0 %32  ;;  %v1035_v42 = vsel %vm890_vm12, 4294967295, %v1034_v42  ;;  %vm894_vm13 = vmor %vm36_vm6, %vm48_vm4 }
  0x86   :  { %vm49_vm7 = vcmp.eq.s32.totalorder %v45_v39, %v868_v34  ;;  %vm37_vm8 = vcmp.eq.s32.totalorder %v33_v40, %v868_v34  ;;  %vm50_vm10 = vcmp.eq.s32.totalorder %v45_v39, %v871_v37  ;;  %vm38_vm11 = vcmp.eq.s32.totalorder %v33_v40, %v871_v37 }
  0x87   :  { %v1037_v43 = vsel %vm894_vm13, 4294967295, %v1036_v43  ;;  %vm51_vm14 = vcmp.eq.s32.totalorder %v45_v39, %v874_v38  ;;  %vm39_vm15 = vcmp.eq.s32.totalorder %v33_v40, %v874_v38  ;;  %vm55_vm1 = vmor %vm37_vm8, %vm49_vm7 }
  0x88   :  { %vm901_vm0 = vmor %vm38_vm11, %vm50_vm10 }
  0x89   :  { %vm57_vm5 = vmor %vm39_vm15, %vm51_vm14  ;;  %vm1044_vm15 = vnez %v1037_v43 }
  0x8a   :  { %v63_v44 = vpop.permute.xlu1 %62  ;;  %v60_v45 = vpop.permute.xlu0 %59 }
  0x8b   :  { %vm67_vm2 = vcmp.eq.s32.totalorder %v63_v44, %v868_v34  ;;  %vm69_vm3 = vcmp.eq.s32.totalorder %v63_v44, %v874_v38  ;;  %vm64_vm4 = vcmp.eq.s32.totalorder %v60_v45, %v868_v34  ;;  %vm66_vm12 = vcmp.eq.s32.totalorder %v60_v45, %v874_v38 }
  0x8c   :  { %vm907_vm6 = vmor %vm55_vm1, %vm67_vm2  ;;  %vm65_vm7 = vcmp.eq.s32.totalorder %v60_v45, %v871_v37  ;;  %vm68_vm14 = vcmp.eq.s32.totalorder %v63_v44, %v871_v37 }
  0x8d   :  { %v1041_v47 = vsel %vm907_vm6, 4294967295, %v1040_v47  ;;  %vm912_vm13 = vmor %vm57_vm5, %vm69_vm3 }
  0x8e   :  { %v1043_v48 = vsel %vm912_vm13, 4294967295, %v1042_v48  ;;  %vm70_vm8 = vmor %vm884_vm9, %vm64_vm4  ;;  %vm1045_vm13 = vnez %v1035_v42 }
  0x8f   :  { %v78_v49 = vpop.permute.xlu1 %77  ;;  %v81_v50 = vpop.permute.xlu0 %80  ;;  %vm72_vm1 = vmor %vm1044_vm15, %vm66_vm12  ;;  %vm1050_vm12 = vnez %v1041_v47 }
  0x90   :  { %vm82_vm10 = vcmp.eq.s32.totalorder %v78_v49, %v868_v34  ;;  %vm84_vm11 = vcmp.eq.s32.totalorder %v78_v49, %v874_v38  ;;  %vm85_vm2 = vcmp.eq.s32.totalorder %v81_v50, %v868_v34  ;;  %vm87_vm5 = vcmp.eq.s32.totalorder %v81_v50, %v874_v38  ;;  %vm928_vm6 = vmor %vm1045_vm13, %vm65_vm7 }
  0x91   :  { %vm88_vm3 = vmor %vm70_vm8, %vm82_vm10  ;;  %vm1053_vm13 = vnez %v1043_v48 }
  0x92   :  { %vm90_vm9 = vmor %vm72_vm1, %vm84_vm11 }
  0x93   :  { %vm934_vm4 = vmor %vm901_vm0, %vm68_vm14 }
  0x94   :  { %v1049_v52 = vsel %vm934_vm4, 4294967295, %v1048_v52  ;;  %vm940_vm15 = vmor %vm1050_vm12, %vm85_vm2  ;;  %v96_v54 = vpop.permute.xlu1 %95  ;;  %v114_v55 = vpop.permute.xlu0 %113 }
  0x95   :  { %vm946_vm7 = vmor %vm1053_vm13, %vm87_vm5  ;;  %vm100_vm8 = vcmp.eq.s32.totalorder %v96_v54, %v868_v34  ;;  %vm102_vm0 = vcmp.eq.s32.totalorder %v96_v54, %v874_v38  ;;  %vm118_vm10 = vcmp.eq.s32.totalorder %v114_v55, %v868_v34  ;;  %vm120_vm14 = vcmp.eq.s32.totalorder %v114_v55, %v874_v38 }
  0x96   :  { %vm106_vm11 = vmor %vm88_vm3, %vm100_vm8  ;;  %vm83_vm5 = vcmp.eq.s32.totalorder %v78_v49, %v871_v37  ;;  %vm86_vm3 = vcmp.eq.s32.totalorder %v81_v50, %v871_v37  ;;  %vm101_vm8 = vcmp.eq.s32.totalorder %v96_v54, %v871_v37 }
  0x97   :  { %vm108_vm1 = vmor %vm90_vm9, %vm102_vm0 }
  0x98   :  { %vm954_vm2 = vmor %vm106_vm11, %vm118_vm10  ;;  %v99_v58 = vpop.permute.xlu1 %98  ;;  %vm1060_vm11 = vnez %v1049_v52 }
  0x99   :  { %v1057_v57 = vsel %vm954_vm2, 4294967295, %v1056_v57  ;;  %vm959_vm12 = vmor %vm108_vm1, %vm120_vm14  ;;  %vm103_vm13 = vcmp.eq.s32.totalorder %v99_v58, %v868_v34  ;;  %vm105_vm4 = vcmp.eq.s32.totalorder %v99_v58, %v874_v38  ;;  %vm104_vm1 = vcmp.eq.s32.totalorder %v99_v58, %v871_v37 }
  0x9a   :  { %v1059_v59 = vsel %vm959_vm12, 4294967295, %v1058_v59  ;;  %vm109_vm9 = vmor %vm940_vm15, %vm103_vm13  ;;  %vm119_vm15 = vcmp.eq.s32.totalorder %v114_v55, %v871_v37 }
  0x9b   :  { %vm111_vm0 = vmor %vm946_vm7, %vm105_vm4 }
  0x9c   :  { %vm89_vm10 = vmor %vm928_vm6, %vm83_vm5  ;;  %vm1061_vm6 = vnez %v1059_v59 }
  0x9d   :  { %v117_v60 = vpop.permute.xlu1 %116  ;;  %vm92_vm14 = vmor %vm1060_vm11, %vm86_vm3  ;;  %v545_v61 = vsel %vm1061_vm6, 1.0, %v732_v6 }
  0x9e   :  { %vm121_vm2 = vcmp.eq.s32.totalorder %v117_v60, %v868_v34  ;;  %vm123_vm12 = vcmp.eq.s32.totalorder %v117_v60, %v874_v38  ;;  %vm107_vm13 = vmor %vm89_vm10, %vm101_vm8  ;;  %vm122_vm7 = vcmp.eq.s32.totalorder %v117_v60, %v871_v37  ;;  %vm1062_vm8 = vnez %v1057_v57 }
  0x9f   :  { %vm127_vm4 = vmor %vm109_vm9, %vm121_vm2  ;;  %v543_v1 = vsel %vm1062_vm8, 1.0, %v732_v6  ;;  %vm1063_vm2 = vmmov 0  }
  0xa0   :  { %vm129_vm5 = vmor %vm111_vm0, %vm123_vm12  ;;  %v546_v62 = vsel %vm127_vm4, 1.0, %v732_v6  ;;  %vm480_vm12 = vcmask 523264  }
  0xa1   :  { %v548_v63 = vsel %vm129_vm5, 1.0, %v732_v6  ;;  %vm110_vm3 = vmor %vm92_vm14, %vm104_vm1  ;;  %v142_v4 = vpack.c.bf16 %v546_v62, %v543_v1 }
  0xa2   :  { %vm125_vm11 = vmor %vm107_vm13, %vm119_vm15  ;;  %v144_v0 = vpack.c.bf16 %v548_v63, %v545_v61 }
  0xa3   :  { %vm128_vm10 = vmor %vm110_vm3, %vm122_vm7  ;;  %v544_v2 = vsel %vm125_vm11, 1.0, %v732_v6 }
  0xa4   :  { %v547_v3 = vsel %vm128_vm10, 1.0, %v732_v6  ;;  %635 = vmatmul.mubr.bf16.vlgmr.msra.gmra.mrb[0].mxu1 %v144_v0 }
  0xa5   :  { %v143_v5 = vpack.c.bf16 %v547_v3, %v544_v2 }
  0xa7   :  { %376 = vmatprep.mubr.bf16.mxu0 %v143_v5 }
  0xa8   :  { %377 = vmatmul.mubr.bf16.vlgmr.msra.gmra.mrb[0].mxu0 %v142_v4 }
  0xa9   :  { %646 = vmatprep.mubr.msk.bf16.mxu0 %vm1063_vm2, %v732_v6  ;;  %639 = vmatpush3.bf16.msra.mxu0 %v694_v7 }
  0xaa   :  { %640 = vmatprep.subr.bf16.mxu0 %v732_v6 }
  0xad   :  { %641 = vmatpush3.bf16.msra.mxu0 %v695_v8 }
  0xae   :  { %642 = vmatprep.subr.bf16.mxu0 %v732_v6 }
  0xb1   :  { %643 = vmatpush3.bf16.msra.mxu0 %v696_v9 }
  0xb2   :  { %644 = vmatprep.subr.bf16.mxu0 %v732_v6 }
  0xb5   :  { %645 = vmatpush3.bf16.msra.mxu0 %v697_v10 }
 0x177   :  { %v419_v11 = vpop.f32.mrb[0].mxu1 }
 0x178   :  { %v636_v12 = vpop.f32.mrb[1].mxu1 }
 0x179   :  { %v422_v13 = vpop.f32.mrb[2].mxu1 }
 0x17a   :  { %v637_v14 = vpop.f32.mrb[3].mxu1 }
 0x17b   :  { %v598_v15 = vpop.f32.mrb[0].mxu0 }
 0x17c   :  { %v599_v17 = vpop.f32.mrb[1].mxu0 }
 0x17d   :  { %v600_v18 = vadd.f32 %v599_v17, %v598_v15  ;;  %v601_v19 = vpop.f32.mrb[2].mxu0 }
 0x17e   :  { %v602_v20 = vpop.f32.mrb[3].mxu0 }
 0x17f   :  { %v379_v21 = vadd.f32 %v600_v18, %v549_v16  ;;  %v603_v22 = vadd.f32 %v602_v20, %v601_v19 }
 0x181   :  { %v420_v23 = vadd.f32 %v419_v11, %v379_v21  ;;  %v382_v24 = vadd.f32 %v603_v22, %v549_v16 }
 0x183   :  { %v574_v25 = vmul.f32 -1.442695, %v420_v23  ;;  %v423_v6 = vadd.f32 %v422_v13, %v382_v24 }
 0x185   :  { %698 = vpow2.f32 %v574_v25  ;;  %v575_v26 = vmul.f32 -1.442695, %v423_v6 }
 0x187   :  { %700 = vpow2.f32 %v575_v26 }
 0x18f   :  { %v699_v27 = vpop.eup %698 }
 0x190   :  { %v432_v28 = vadd.f32 1.0, %v699_v27 }
 0x191   :  { %v701_v29 = vpop.eup %700 }
 0x192   :  { %702 = vrcp.f32 %v432_v28  ;;  %v433_v30 = vadd.f32 1.0, %v701_v29 }
 0x194   :  { %704 = vrcp.f32 %v433_v30 }
 0x19c   :  { %v703_v31 = vpop.eup %702 }
 0x19d   :  { %v438_v33 = vmul.f32 %v703_v31, %v420_v23 }
 0x19e   :  { %v705_v32 = vpop.eup %704 }
 0x19f   :  { %v439_v34 = vmul.f32 %v705_v32, %v423_v6 }
 0x1a1   :  { %v440_v35 = vpack.c.bf16 %v439_v34, %v438_v33 }
 0x1a3   :  { %647 = vmatmul.mubr.msk.bf16.vlgmr.msra.gmra.mrb[4].mxu0 %vm480_vm12, %v440_v35 }
 0x276   :  { %v518_v37 = vpop.f32.mrb[4].mxu0 }
 0x277   :  { %v519_v38 = vadd.f32 %v576_v36, %v518_v37  ;;  %v648_v39 = vpop.f32.mrb[5].mxu0 }
 0x278   :  { %v521_v40 = vpop.f32.mrb[6].mxu0 }
 0x279   :  { %525 = vst.msk [vmem:[#allocation2] sm:$0xff] %vm480_vm12, %v519_v38  ;;  %v522_v41 = vadd.f32 %v576_v36, %v521_v40  ;;  %v649_v42 = vpop.f32.mrb[7].mxu0 }
 0x27b   :  { %526 = vst.msk [vmem:[#allocation2 + $0x8] sm:$0xff] %vm480_vm12, %v522_v41 }
 0x27c   :  { %717 = shalt.err (!%p714_p4)
}
 0x27d   :  { %s718_s30 = scalar_lea.hbm %s1030_s5, 256 }
 0x27e   :  { %p719_p5 = scmp.ne.s32.totalorder %s1030_s5, %s718_s30  ;;  %p722_p6 = scmp.lt.u32.totalorder %s718_s30, %s1030_s5 }
 0x280   :  { %p724_p7 = pnand %p722_p6, %p719_p5 }
 0x282   :  { %727 = shalt.err (!%p724_p7)
}
 0x283   :  { %s739_s10 = smov 128   ;;  %s740_s11 = smov 8  }
 0x284   :  { %538 = dma.vmem_to_hbm [thread:$0]  %s533_s0, 256, %s1030_s5, [#allocation3], %s739_s10, %s739_s10, %s740_s11  }
 0x285   :  { %728 = dma.done.wait [#allocation3], 256  }
 0x286   :  { %729 = vsyncadd [#allocation3], 4294967040 }
 0x287   :  { %542 = vsyncpa [#allocation3], 1 }

</bundles_post_ra>
